<compile_context>
chip_gen: v5e
topology: v5e:2x2
jax: 0.10.0
libtpu: 0.0.40
codegen_flags: <defaults>
</compile_context>

<pallas_src>
import math

import numpy as np
import jax
import jax.numpy as jnp
from jax.experimental import pallas as pl
from jax.experimental.pallas import tpu as pltpu


def _round_up(x, m):
    return ((x + m - 1) // m) * m


# --------------------------------------------------------------------------- #
# Kernels
# --------------------------------------------------------------------------- #

def _encoder_kernel_fused(x_ref, w_ref, b_ref, o_ref):
    """One batch tile of l2norm(x @ Wt + b); whole K in a single step.

    x_ref: (tb, K)   input dtype (bf16 used directly, others cast in-register)
    w_ref: (K, Np)   bf16, pre-transposed + lane-padded at init time
    b_ref: (1, Np)   f32
    o_ref: (tb, Np)
    """
    x = x_ref[...].astype(jnp.bfloat16)
    feats = jnp.dot(x, w_ref[...], preferred_element_type=jnp.float32)
    feats = feats + b_ref[...].astype(jnp.float32)

    sq_sum = jnp.sum(feats * feats, axis=-1, keepdims=True)
    inv_norm = jax.lax.rsqrt(sq_sum + 1e-12)   # eps keeps all-zero rows finite
    o_ref[...] = (feats * inv_norm).astype(o_ref.dtype)


def _encoder_kernel_ktiled(x_ref, w_ref, b_ref, o_ref, acc_ref):
    """K-tiled variant for weights too large for VMEM: grid = (nb, nk),
    K axis last / "arbitrary", f32 accumulator, bias + l2norm in the finalize."""
    k = pl.program_id(1)

    @pl.when(k == 0)
    def _():
        acc_ref[...] = jnp.zeros_like(acc_ref)

    x = x_ref[...].astype(jnp.bfloat16)
    acc_ref[...] += jnp.dot(x, w_ref[...], preferred_element_type=jnp.float32)

    @pl.when(k == pl.num_programs(1) - 1)
    def _():
        feats = acc_ref[...] + b_ref[...].astype(jnp.float32)
        sq_sum = jnp.sum(feats * feats, axis=-1, keepdims=True)
        inv_norm = jax.lax.rsqrt(sq_sum + 1e-12)
        o_ref[...] = (feats * inv_norm).astype(o_ref.dtype)


# --------------------------------------------------------------------------- #
# Parameter preparation (one-time, mirrors nn.Linear + init_weights)
# --------------------------------------------------------------------------- #

def init_params(key, img_dim, embed_size):
    """Xavier-uniform weight (embed, img_dim), zero bias — mirrors init_weights()."""
    r = math.sqrt(6.0) / math.sqrt(img_dim + embed_size)
    weight = jax.random.uniform(
        key, (embed_size, img_dim), minval=-r, maxval=r, dtype=jnp.float32)
    bias = jnp.zeros((embed_size,), dtype=jnp.float32)
    return weight, bias


def prepare_params(weight, bias, *, param_dtype=jnp.bfloat16):
    """One-time conversion of PyTorch-layout Linear params for the kernel:
    transpose to (img_dim, embed), cast to bf16, pad embed to the next multiple
    of 128 (lane-dense output; zero columns do not affect the l2 norm)."""
    embed, img_dim = weight.shape
    n_pad = _round_up(embed, 128)
    w_t = jnp.zeros((img_dim, n_pad), dtype=param_dtype)
    w_t = w_t.at[:, :embed].set(weight.T.astype(param_dtype))
    b2 = jnp.zeros((1, n_pad), dtype=jnp.float32)
    b2 = b2.at[0, :embed].set(bias.astype(jnp.float32))
    return w_t, b2


# --------------------------------------------------------------------------- #
# Wrapper
# --------------------------------------------------------------------------- #

def _vmem_capacity_bytes():
    try:
        cap = getattr(pltpu.get_tpu_info(), "vmem_capacity_bytes", None)
        if cap:
            return int(cap)
    except Exception:
        pass
    return 64 * 2**20   # conservative fallback (v7x per-TensorCore size)


def _invariant_spec(shape, n_grid_args):
    """BlockSpec for a grid-invariant block, single-buffered when supported."""
    if n_grid_args == 1:
        index_map = lambda i: (0,) * len(shape)
    else:
        index_map = lambda i, k: (0,) * len(shape)
    try:
        return pl.BlockSpec(shape, index_map, pipeline_mode=pl.Buffered(1))
    except (TypeError, AttributeError):   # older jax: fall back to default 2-deep
        return pl.BlockSpec(shape, index_map)


def encoder_image_precomp(images, w_t, b2, embed_size, *, out_dtype=jnp.float32):
    """images: (B, img_dim) (f32 or bf16); w_t/b2: outputs of prepare_params().
    Returns (B, embed_size) L2-normalized features."""
    B, K = images.shape
    Kw, Np = w_t.shape
    assert Kw == K, "weight/feature dim mismatch"
    assert Np % 128 == 0 and embed_size <= Np

    x_bytes = images.dtype.itemsize
    w_bytes = w_t.dtype.itemsize
    out_bytes = np.dtype(out_dtype).itemsize

    vmem_cap = _vmem_capacity_bytes()
    vmem_budget = int(0.75 * vmem_cap)          # leave headroom for internal scratch
    is_small_vmem = vmem_cap <= 64 * 2**20      # v7x-like (dual-TC, 64 MiB/TC)

    def fused_need(tb):
        # 2x-buffered x tile + single-buffered weight/bias + 2x-buffered out tile
        # + f32 intermediates (feats, feats*feats).
        return (2 * tb * K * x_bytes
                + K * Np * w_bytes + Np * 4
                + 2 * tb * Np * out_bytes
                + 2 * tb * Np * 4)

    def ktiled_need(tb, tk):
        return (2 * tb * tk * x_bytes
                + 2 * tk * Np * w_bytes + Np * 4
                + 2 * tb * Np * out_bytes
                + tb * Np * 4            # accumulator scratch
                + 2 * tb * Np * 4)       # finalize f32 intermediates

    # --- batch tile: MXU aligned, no tiny-tile heuristics on single-TC chips.
    if B <= 128:
        tb = max(8, _round_up(B, 8))
    else:
        tb = 512 if B >= 512 else (256 if B >= 256 else 128)
        # v7x dual-TC: only split a single-step grid into two even halves when
        # each half stays >= 256 rows (small tiles cost more than the 2nd TC gains).
        if is_small_vmem and B >= 512 and pl.cdiv(B, tb) == 1:
            tb = max(256, _round_up(pl.cdiv(B, 2), 128))

    # --- choose fused vs K-tiled based on the VMEM budget.
    tk = None
    if fused_need(tb) > vmem_budget:
        # Prefer K-tiling over shrinking the batch tile (keeps MXU fill and
        # lane/sublane-dense output stores).
        for cand in (2048, 1024, 512, 256, 128):
            if cand < K and K % cand == 0 and ktiled_need(tb, cand) <= vmem_budget:
                tk = cand
                break
        if tk is None:
            while tb > 128 and fused_need(tb) > vmem_budget:
                tb = max(128, _round_up(tb // 2, 128))

    use_ktile = tk is not None
    need = ktiled_need(tb, tk) if use_ktile else fused_need(tb)
    vmem_limit = int(min(max(int(1.25 * need), 16 * 2**20), vmem_budget))

    # No jnp.pad: cdiv grid + Pallas partial-block masking handles a ragged
    # batch (garbage rows beyond B are row-independent and never stored).
    if not use_ktile:
        grid = (pl.cdiv(B, tb),)
        out = pl.pallas_call(
            _encoder_kernel_fused,
            out_shape=jax.ShapeDtypeStruct((B, Np), out_dtype),
            grid_spec=pltpu.PrefetchScalarGridSpec(
                num_scalar_prefetch=0,
                grid=grid,
                in_specs=[
                    pl.BlockSpec((tb, K), lambda i: (i, 0)),     # batch tile of x
                    _invariant_spec((K, Np), 1),                 # whole weight, 1-buffered
                    _invariant_spec((1, Np), 1),                 # bias, 1-buffered
                ],
                out_specs=pl.BlockSpec((tb, Np), lambda i: (i, 0)),
            ),
            compiler_params=pltpu.CompilerParams(
                dimension_semantics=("parallel",),
                vmem_limit_bytes=vmem_limit,
            ),
        )(images, w_t, b2)
    else:
        grid = (pl.cdiv(B, tb), K // tk)
        out = pl.pallas_call(
            _encoder_kernel_ktiled,
            out_shape=jax.ShapeDtypeStruct((B, Np), out_dtype),
            grid_spec=pltpu.PrefetchScalarGridSpec(
                num_scalar_prefetch=0,
                grid=grid,
                in_specs=[
                    pl.BlockSpec((tb, tk), lambda i, k: (i, k)),  # x tile
                    pl.BlockSpec((tk, Np), lambda i, k: (k, 0)),  # weight K-slab
                    _invariant_spec((1, Np), 2),                  # bias, 1-buffered
                ],
                out_specs=pl.BlockSpec((tb, Np), lambda i, k: (i, 0)),
                scratch_shapes=[pltpu.VMEM((tb, Np), jnp.float32)],
            ),
            compiler_params=pltpu.CompilerParams(
                dimension_semantics=("parallel", "arbitrary"),
                vmem_limit_bytes=vmem_limit,
            ),
        )(images, w_t, b2)

    # Strip the embed padding only when needed (no-op / no copy when the
    # embedding width is already a multiple of 128, e.g. 1024).
    if embed_size == Np:
        return out
    return out[:, :embed_size]


if __name__ == "__main__":
    # Small shapes consistent with the module: precomputed region/image
    # features of dimension img_dim -> embed_size.
    batch, img_dim, embed_size = 8, 32, 32

    key = jax.random.PRNGKey(0)
    k_x, k_w = jax.random.split(key)
    images = jax.random.normal(k_x, (batch, img_dim), dtype=jnp.float32)
    weight, bias = init_params(k_w, img_dim, embed_size)

    # One-time parameter preparation (transpose / bf16 cast / lane padding).
    w_t, b2 = prepare_params(weight, bias)

    out = encoder_image_precomp(images, w_t, b2, embed_size)
    out = jax.block_until_ready(out)

    # Reference in plain f32 JAX (module semantics: fc(images.float()) + l2norm).
    ref = images @ weight.T + bias
    ref = ref / jnp.sqrt(jnp.sum(ref * ref, axis=-1, keepdims=True))
    assert out.shape == (batch, embed_size)
    assert jnp.allclose(out, ref, atol=2e-2, rtol=2e-2), \
        float(jnp.max(jnp.abs(out - ref)))

    # TODO(synk): the `list`-of-tensors branch (torch.cat + split bookkeeping)
    # is host-side glue; concatenate inputs before calling this kernel.
    print("KERNEL_OK")
</pallas_src>

<mosaic_0001>
module attributes {stable_mosaic.version = 11 : i64} {
  func.func @_encoder_kernel_fused(%arg0: i32, %arg1: memref<8x32xf32, #tpu.memory_space<vmem>>, %arg2: memref<32x128xbf16, #tpu.memory_space<vmem>>, %arg3: memref<1x128xf32, #tpu.memory_space<vmem>>, %arg4: memref<8x128xf32, #tpu.memory_space<vmem>>) attributes {dimension_semantics = [#tpu.dimension_semantics<parallel>], iteration_bounds = array<i64: 1>, scalar_prefetch = 0 : i64, scratch_operands = 0 : i64, tpu.core_type = #tpu.core_type<tc>, window_params = [{transform_indices = @transform_0, window_bounds = array<i64: 8, 32>}, {pipeline_mode = #tpu.pipeline_mode<synchronous>, transform_indices = @transform_1, window_bounds = array<i64: 32, 128>}, {pipeline_mode = #tpu.pipeline_mode<synchronous>, transform_indices = @transform_2, window_bounds = array<i64: 1, 128>}, {transform_indices = @transform_3, window_bounds = array<i64: 8, 128>}]} {
    %c0 = arith.constant 0 : index
    %c0_0 = arith.constant 0 : index
    %0 = vector.load %arg1[%c0, %c0_0] : memref<8x32xf32, #tpu.memory_space<vmem>>, vector<8x32xf32>
    %1 = arith.truncf %0 : vector<8x32xf32> to vector<8x32xbf16>
    %c0_1 = arith.constant 0 : index
    %c0_2 = arith.constant 0 : index
    %2 = vector.load %arg2[%c0_1, %c0_2] : memref<32x128xbf16, #tpu.memory_space<vmem>>, vector<32x128xbf16>
    %cst = arith.constant dense<0.000000e+00> : vector<8x128xf32>
    %3 = tpu.matmul %1, %2, %cst {dimension_numbers = #tpu.dot_dimension_numbers<[1], [0], [0], [1], [0, 0, 1, 1], [], []>} : vector<8x32xbf16>, vector<32x128xbf16>, vector<8x128xf32> -> vector<8x128xf32>
    %c0_3 = arith.constant 0 : index
    %c0_4 = arith.constant 0 : index
    %4 = vector.load %arg3[%c0_3, %c0_4] : memref<1x128xf32, #tpu.memory_space<vmem>>, vector<1x128xf32>
    %5 = vector.broadcast %4 : vector<1x128xf32> to vector<8x128xf32>
    %6 = arith.addf %3, %5 : vector<8x128xf32>
    %7 = arith.mulf %6, %6 : vector<8x128xf32>
    %cst_5 = arith.constant dense<0.000000e+00> : vector<8xf32>
    %8 = vector.multi_reduction <add>, %7, %cst_5 [1] : vector<8x128xf32> to vector<8xf32>
    %9 = vector.shape_cast %8 : vector<8xf32> to vector<8x1xf32>
    %cst_6 = arith.constant 9.99999996E-13 : f32
    %10 = vector.broadcast %cst_6 : f32 to vector<8x1xf32>
    %11 = arith.addf %9, %10 : vector<8x1xf32>
    %12 = math.rsqrt %11 : vector<8x1xf32>
    %13 = vector.broadcast %12 : vector<8x1xf32> to vector<8x128xf32>
    %14 = arith.mulf %6, %13 : vector<8x128xf32>
    %c0_7 = arith.constant 0 : index
    %c0_8 = arith.constant 0 : index
    %15 = vector.load %arg4[%c0_7, %c0_8] : memref<8x128xf32, #tpu.memory_space<vmem>>, vector<8x128xf32>
    tpu.vector_store %arg4[%c0_7, %c0_8], %14 {strides = array<i32>} : memref<8x128xf32, #tpu.memory_space<vmem>>, vector<8x128xf32>,
    return
  }
  func.func @transform_0(%arg0: i32) -> (i32, i32) {
    %c0_i32 = arith.constant 0 : i32
    %c0_i32_0 = arith.constant 0 : i32
    return %arg0, %c0_i32 : i32, i32
  }
  func.func @transform_1(%arg0: i32) -> (i32, i32) {
    %c0_i32 = arith.constant 0 : i32
    %c0_i32_0 = arith.constant 0 : i32
    %c0_i32_1 = arith.constant 0 : i32
    return %c0_i32, %c0_i32_0 : i32, i32
  }
  func.func @transform_2(%arg0: i32) -> (i32, i32) {
    %c0_i32 = arith.constant 0 : i32
    %c0_i32_0 = arith.constant 0 : i32
    %c0_i32_1 = arith.constant 0 : i32
    return %c0_i32, %c0_i32_0 : i32, i32
  }
  func.func @transform_3(%arg0: i32) -> (i32, i32) {
    %c0_i32 = arith.constant 0 : i32
    %c0_i32_0 = arith.constant 0 : i32
    return %arg0, %c0_i32 : i32, i32
  }
}

</mosaic_0001>

<bundles_post_ra>
// kernel: tpu_custom_call.1
= control target key start
LH: loop header
LB: loop body
LE: loop exit
PB: predicated region body
PF: predicated region fallthrough
CT: control target
= control target key end

     0   :  { %8 = vsyncpa [#allocation3], 0  ;;  %s253_s0 = inlined_call_operand.hbm [shape: f32[8,32], index: 0, kind: input, shape index: {}]   ;;  %s254_s1 = inlined_call_operand.hbm [shape: bf16[32,128], index: 1, kind: input, shape index: {}]   ;;  %s255_s2 = inlined_call_operand.vmem [shape: f32[1,128], index: 2, kind: input, shape index: {}]   ;;  %s256_s3 = inlined_call_operand.hbm [shape: f32[8,128], index: 3, kind: output, shape index: {}]  }
   0x1   :  { %9 = vsyncpa [#allocation6], 0 }
   0x2   :  { %10 = vsyncpa [#allocation4], 0  ;;  %s16_s14 = sshll.u32 %s253_s0, 4  ;;  %s216_s15 = smov [#allocation2]   ;;  %s17_s14 = int_to_ptr.hbm [resolvable:$true] %s16_s14 }
   0x3   :  { %s18_s16 = sshll.u32 %s216_s15, 4  ;;  %s26_s19 = sshll.u32 %s254_s1, 4  ;;  %s19_s16 = int_to_ptr.vmem [resolvable:$true] %s18_s16  ;;  %s27_s19 = int_to_ptr.hbm [resolvable:$true] %s26_s19 }
   0x4   :  { %21 = dma.hbm_to_vmem [thread:$0]  %s17_s14, 128, %s19_s16, [#allocation3]  }
   0x5   :  { %s217_s20 = smov [#allocation5]   ;;  %s218_s22 = smov 64  }
   0x6   :  { %s28_s21 = sshll.u32 %s217_s20, 4  ;;  %s219_s23 = smov 4   ;;  %s29_s21 = int_to_ptr.vmem [resolvable:$true] %s28_s21 }
   0x7   :  { %34 = dma.hbm_to_vmem [thread:$0]  %s27_s19, 256, %s29_s21, [#allocation6], %s218_s22, %s218_s22, %s219_s23  }
   0x8   :  { %210 = dma.done.wait [#allocation3], 128  }
   0x9   :  { %211 = vsyncadd [#allocation3], 4294967168 }
   0xa   :  { %212 = dma.done.wait [#allocation6], 256  }
   0xb   :  { %213 = vsyncadd [#allocation6], 4294967040  ;;  %v129_v0 = vld [vmem:[#allocation5 + $0x8] sm:$0xff]  ;;  %v128_v1 = vld [vmem:[#allocation5] sm:$0xff]  ;;  %vm68_vm0 = vcmask 261120   ;;  %s220_s24 = smov [#allocation7]  }
   0xc   :  { %78 = vmatpush.bf16.msra.mxu0 %v129_v0  ;;  %v46_v2 = vld [vmem:[#allocation2] sm:$0xff]  ;;  %s106_s25 = sshll.u32 %s220_s24, 4  ;;  %s108_s27 = sshll.u32 %s256_s3, 4  ;;  %s107_s25 = int_to_ptr.vmem [resolvable:$true] %s106_s25  ;;  %s109_s27 = int_to_ptr.hbm [resolvable:$true] %s108_s27 }
   0xd   :  { %v47_v3 = vpack.c.bf16 %v46_v2, %v46_v2  ;;  %v135_v4 = vld [vmem:[%s255_s2] ss:$0 sm:$0xff] }
  0x10   :  { %79 = vmatpush.bf16.msra.mxu0 %v128_v1 }
  0x13   :  { %127 = vmatmul.msk.bf16.vlgmr.msra.gmra.mxu0 %vm68_vm0, %v47_v3 }
  0x90   :  { %v81_v5 = vpop.f32.mrf.mxu0 }
  0x91   :  { %v82_v6 = vadd.f32 %v135_v4, %v81_v5 }
  0x93   :  { %v85_v7 = vmul.f32 %v82_v6, %v82_v6 }
  0x95   :  { %86 = vadd.xlane.f32.xlu0 %v85_v7 }
  0x98   :  { %v83_v8 = vpop.f32.mrf.mxu0 }
 0x108   :  { %v87_v9 = vpop.xlane.xlu0 %86 }
 0x109   :  { %v88_v10 = vadd.f32 1e-12, %v87_v9 }
 0x10b   :  { %136 = vrsqrt.f32 %v88_v10  ;;  %vm95_vm2 = vweird.f32 %v88_v10 }
 0x111   :  { %v137_v11 = vpop.eup %136 }
 0x112   :  { %v90_v12 = vmul.f32 %v137_v11, %v88_v10  ;;  %vm96_vm1 = vweird.f32 %v137_v11 }
 0x113   :  { %vm97_vm3 = vmor %vm95_vm2, %vm96_vm1 }
 0x114   :  { %v91_v13 = vmul.f32 %v137_v11, %v90_v12 }
 0x116   :  { %v92_v14 = vmul.f32 0.5, %v91_v13 }
 0x118   :  { %v93_v15 = vsub.f32 1.5, %v92_v14 }
 0x11a   :  { %v94_v16 = vmul.f32 %v137_v11, %v93_v15 }
 0x11c   :  { %v98_v17 = vsel %vm97_vm3, %v137_v11, %v94_v16 }
 0x11d   :  { %v99_v18 = vmul.f32 %v98_v17, %v82_v6 }
 0x11f   :  { %100 = vst [vmem:[#allocation7] sm:$0xff] %v99_v18 }
 0x120   :  { %111 = dma.vmem_to_hbm [thread:$0]  %s107_s25, 128, %s109_s27, [#allocation4]  }
 0x121   :  { %214 = dma.done.wait [#allocation4], 128  }
 0x122   :  { %215 = vsyncadd [#allocation4], 4294967168 }
 0x123   :  { %116 = vsyncpa [#allocation3], 1 }
 0x124   :  { %117 = vsyncpa [#allocation6], 1 }
 0x125   :  { %118 = vsyncpa [#allocation4], 1 }

</bundles_post_ra>
